<compile_context>
chip_gen: v5e
topology: v5e:2x2
jax: 0.10.0
libtpu: 0.0.40
codegen_flags: <defaults>
</compile_context>

<pallas_src>
import jax
import jax.numpy as jnp
from jax.experimental import pallas as pl
from jax.experimental.pallas import tpu as pltpu


def _h_swish_kernel(x_ref, o_ref):
    # h_swish(x) = x * ReLU6(x + 3) / 6   (ReLU6 == clip to [0, 6])
    x = x_ref[...].astype(jnp.float32)            # f32 math; mem-bound => free
    hs = jnp.clip(x + 3.0, 0.0, 6.0) * (1.0 / 6.0)
    o_ref[...] = (x * hs).astype(o_ref.dtype)


def _h_swish_jnp(x):
    """Plain-jnp h_swish (tail / tiny-tensor path), f32 intermediates."""
    xf = x.astype(jnp.float32)
    return (xf * (jnp.clip(xf + 3.0, 0.0, 6.0) * (1.0 / 6.0))).astype(x.dtype)


def _vmem_budget():
    """(target_block_bytes, vmem_limit_bytes) for the current TPU generation.

    Invariant: 4 x block_bytes (2 double-buffered input + 2 output blocks)
    plus headroom stays under vmem_limit_bytes, which in turn stays well under
    physical VMEM on every generation (v7x: 64 MiB per TensorCore).
    """
    try:
        phys = int(pltpu.get_tpu_info().vmem_capacity_bytes)
    except Exception:  # be conservative if the query is unavailable
        phys = 64 << 20
    if phys >= (100 << 20):          # v5e / v6e: 128 MiB physical VMEM
        return 6 << 20, 48 << 20
    return 4 << 20, 24 << 20         # v7x: 64 MiB -> 4x4 MiB + headroom <= 24 MiB


def h_swish(x: jax.Array, *, target_block_bytes: int | None = None,
            donate_input: bool = False) -> jax.Array:
    """Elementwise h_swish on an arbitrarily shaped tensor.

    Only set donate_input=True when the caller genuinely donates `x` at the
    jit boundary; the output then reuses the input HBM buffer. If the buffer
    is not actually donatable, XLA inserts a defensive copy that erases any
    gain on this memory-bound op, so the default is False.
    """
    orig_shape = x.shape
    n = int(x.size)
    if n == 0:
        return x

    flat = x.reshape(-1)
    itemsize = jnp.dtype(x.dtype).itemsize

    # Split off the (<128-element) tail so the Pallas path never needs a
    # full-tensor pad / slice round trip.
    main_n = (n // 128) * 128
    tail_n = n - main_n
    if main_n == 0:                              # tiny tensor: not worth a kernel
        return _h_swish_jnp(flat).reshape(orig_shape)

    auto_block, vmem_limit = _vmem_budget()
    block_bytes = auto_block if target_block_bytes is None else target_block_bytes

    # Widest lane dim (multiple of 128, capped at 4096) dividing the prefix:
    # the lane-dense reshape is free and vector stores are unmasked.
    L = 128
    for cand in range(min(4096, main_n), 127, -128):
        if main_n % cand == 0:
            L = cand
            break
    rows = main_n // L

    # Row-block size: ~block_bytes per block, rounded to the sublane packing,
    # but always >= 2 grid steps for tensors above ~2 MiB so both v7x
    # TensorCores get work.
    sub = 8 if itemsize >= 4 else (16 if itemsize == 2 else 32)
    min_steps = 2 if main_n * itemsize > (2 << 20) else 1
    target_rows = max(sub, block_bytes // (L * itemsize))
    tr_cap = min(target_rows, max(1, rows // min_steps))
    if tr_cap >= rows:
        tr = rows                                # single full-extent block (always legal)
    else:
        tr = min(rows, max(sub, (tr_cap // sub) * sub))
    grid = (pl.cdiv(rows, tr),)                  # partial last block handled by masking

    x2d = flat[:main_n].reshape(rows, L)
    out2d = pl.pallas_call(
        _h_swish_kernel,
        out_shape=jax.ShapeDtypeStruct((rows, L), x.dtype),
        grid=grid,
        in_specs=[pl.BlockSpec((tr, L), lambda i: (i, 0))],
        out_specs=pl.BlockSpec((tr, L), lambda i: (i, 0)),
        compiler_params=pltpu.CompilerParams(
            dimension_semantics=("parallel",),
            vmem_limit_bytes=vmem_limit,
        ),
        cost_estimate=pl.CostEstimate(
            flops=5 * main_n,
            transcendentals=0,
            bytes_accessed=2 * main_n * itemsize),
        input_output_aliases=({0: 0} if donate_input else {}),
    )(x2d)

    out_main = out2d.reshape(-1)
    if tail_n == 0:
        return out_main.reshape(orig_shape)
    out_tail = _h_swish_jnp(flat[main_n:])
    return jnp.concatenate([out_main, out_tail]).reshape(orig_shape)


def _h_swish_ref(x):
    xf = x.astype(jnp.float32)
    return xf * (jnp.clip(xf + 3.0, 0.0, 6.0) / 6.0)


if __name__ == "__main__":
    key = jax.random.PRNGKey(0)
    # NCHW, matching the PyTorch module (op is elementwise / layout agnostic).
    x = jax.random.normal(key, (2, 4, 16, 16), dtype=jnp.float32) * 4.0
    out = jax.block_until_ready(h_swish(x))
    assert out.shape == x.shape and out.dtype == x.dtype
    assert jnp.allclose(out, _h_swish_ref(x), atol=1e-6, rtol=1e-6)

    # Awkward element count (945): exercises the prefix + jnp-tail path
    # (no full-tensor pad/slice round trip anymore).
    x2 = jax.random.normal(jax.random.PRNGKey(1), (3, 5, 7, 9), dtype=jnp.float32)
    out2 = jax.block_until_ready(h_swish(x2))
    assert jnp.allclose(out2, _h_swish_ref(x2), atol=1e-6, rtol=1e-6)

    # bfloat16 input: bf16 loads/stores, f32 intermediates inside the kernel.
    x3 = jax.random.normal(jax.random.PRNGKey(2), (2, 8, 32, 32), dtype=jnp.bfloat16)
    out3 = jax.block_until_ready(h_swish(x3))
    assert out3.shape == x3.shape and out3.dtype == jnp.bfloat16
    assert jnp.allclose(out3.astype(jnp.float32), _h_swish_ref(x3),
                        atol=5e-2, rtol=5e-2)

    # Mid-size tensor (> 2 MiB): exercises the multi-block (>= 2 grid steps) path.
    x4 = jax.random.normal(jax.random.PRNGKey(3), (4, 64, 64, 64), dtype=jnp.float32)
    out4 = jax.block_until_ready(h_swish(x4))
    assert jnp.allclose(out4, _h_swish_ref(x4), atol=1e-6, rtol=1e-6)

    print("KERNEL_OK")
</pallas_src>

<mosaic_0001>
module attributes {stable_mosaic.version = 11 : i64} {
  func.func @_h_swish_kernel(%arg0: i32, %arg1: memref<1x2048xf32, #tpu.memory_space<vmem>>, %arg2: memref<1x2048xf32, #tpu.memory_space<vmem>>) attributes {dimension_semantics = [#tpu.dimension_semantics<parallel>], iteration_bounds = array<i64: 1>, scalar_prefetch = 0 : i64, scratch_operands = 0 : i64, tpu.core_type = #tpu.core_type<tc>, window_params = [{transform_indices = @transform_0, window_bounds = array<i64: 1, 2048>}, {transform_indices = @transform_1, window_bounds = array<i64: 1, 2048>}]} {
    %c0 = arith.constant 0 : index
    %c0_0 = arith.constant 0 : index
    %0 = vector.load %arg1[%c0, %c0_0] : memref<1x2048xf32, #tpu.memory_space<vmem>>, vector<1x2048xf32>
    %cst = arith.constant 3.000000e+00 : f32
    %1 = vector.broadcast %cst : f32 to vector<1x2048xf32>
    %2 = arith.addf %0, %1 : vector<1x2048xf32>
    %cst_1 = arith.constant 0.000000e+00 : f32
    %cst_2 = arith.constant 6.000000e+00 : f32
    %3 = vector.broadcast %cst_1 : f32 to vector<1x2048xf32>
    %4 = arith.maximumf %3, %2 : vector<1x2048xf32>
    %5 = vector.broadcast %cst_2 : f32 to vector<1x2048xf32>
    %6 = arith.minimumf %5, %4 : vector<1x2048xf32>
    %cst_3 = arith.constant 0.166666672 : f32
    %7 = vector.broadcast %cst_3 : f32 to vector<1x2048xf32>
    %8 = arith.mulf %6, %7 : vector<1x2048xf32>
    %9 = arith.mulf %0, %8 : vector<1x2048xf32>
    %c0_4 = arith.constant 0 : index
    %c0_5 = arith.constant 0 : index
    %10 = vector.load %arg2[%c0_4, %c0_5] : memref<1x2048xf32, #tpu.memory_space<vmem>>, vector<1x2048xf32>
    tpu.vector_store %arg2[%c0_4, %c0_5], %9 {strides = array<i32>} : memref<1x2048xf32, #tpu.memory_space<vmem>>, vector<1x2048xf32>,
    return
  }
  func.func @transform_0(%arg0: i32) -> (i32, i32) {
    %c0_i32 = arith.constant 0 : i32
    %c0_i32_0 = arith.constant 0 : i32
    return %arg0, %c0_i32 : i32, i32
  }
  func.func @transform_1(%arg0: i32) -> (i32, i32) {
    %c0_i32 = arith.constant 0 : i32
    %c0_i32_0 = arith.constant 0 : i32
    return %arg0, %c0_i32 : i32, i32
  }
}

</mosaic_0001>

<bundles_post_ra>
// kernel: tpu_custom_call.1
= control target key start
LH: loop header
LB: loop body
LE: loop exit
PB: predicated region body
PF: predicated region fallthrough
CT: control target
= control target key end

     0   :  { %6 = vsyncpa [#allocation3], 0  ;;  %s126_s0 = inlined_call_operand.hbm [shape: f32[1,2048], index: 0, kind: input, shape index: {}]   ;;  %s127_s1 = inlined_call_operand.hbm [shape: f32[1,2048], index: 1, kind: output, shape index: {}]  }
   0x1   :  { %7 = vsyncpa [#allocation4], 0  ;;  %s13_s8 = sshll.u32 %s126_s0, 4  ;;  %s108_s9 = smov [#allocation2]   ;;  %s14_s8 = int_to_ptr.hbm [resolvable:$true] %s13_s8 }
   0x2   :  { %s15_s10 = sshll.u32 %s108_s9, 4  ;;  %s16_s10 = int_to_ptr.vmem [resolvable:$true] %s15_s10 }
   0x3   :  { %18 = dma.hbm_to_vmem [thread:$0]  %s14_s8, 256, %s16_s10, [#allocation3]  }
   0x4   :  { %104 = dma.done.wait [#allocation3], 256  }
   0x5   :  { %105 = vsyncadd [#allocation3], 4294967040  ;;  %v23_v0 = vld [vmem:[#allocation2] sm:$0xff]  ;;  %v24_v1 = vld [vmem:[#allocation2 + $0x8] sm:$0xff]  ;;  %s109_s11 = smov [#allocation5]   ;;  %s44_s14 = sshll.u32 %s127_s1, 4  ;;  %s45_s14 = int_to_ptr.hbm [resolvable:$true] %s44_s14 }
   0x6   :  { %v25_v2 = vadd.f32 3.0, %v23_v0  ;;  %v26_v3 = vadd.f32 3.0, %v24_v1  ;;  %s42_s12 = sshll.u32 %s109_s11, 4  ;;  %s43_s12 = int_to_ptr.vmem [resolvable:$true] %s42_s12 }
   0x8   :  { %v27_v4 = vmax.f32 %v25_v2, 0.0  ;;  %v28_v5 = vmax.f32 %v26_v3, 0.0 }
   0xa   :  { %v29_v6 = vmin.f32 %v27_v4, 6.0  ;;  %v30_v7 = vmin.f32 %v28_v5, 6.0 }
   0xc   :  { %v31_v8 = vmul.f32 0.16666667, %v29_v6  ;;  %v32_v9 = vmul.f32 0.16666667, %v30_v7 }
   0xe   :  { %v33_v10 = vmul.f32 %v31_v8, %v23_v0  ;;  %v34_v11 = vmul.f32 %v32_v9, %v24_v1 }
  0x10   :  { %35 = vst [vmem:[#allocation5] sm:$0xff] %v33_v10 }
  0x11   :  { %36 = vst [vmem:[#allocation5 + $0x8] sm:$0xff] %v34_v11 }
  0x12   :  { %47 = dma.vmem_to_hbm [thread:$0]  %s43_s12, 256, %s45_s14, [#allocation4]  }
  0x13   :  { %106 = dma.done.wait [#allocation4], 256  }
  0x14   :  { %107 = vsyncadd [#allocation4], 4294967040 }
  0x15   :  { %52 = vsyncpa [#allocation3], 1 }
  0x16   :  { %53 = vsyncpa [#allocation4], 1 }

</bundles_post_ra>
